<compile_context>
chip_gen: v7x
topology: tpu7x:2x2x1
jax: 0.10.0
libtpu: 0.0.40
codegen_flags: <defaults>
</compile_context>

<pallas_src>
import functools

import jax
import jax.numpy as jnp
from jax import lax
from jax.experimental import pallas as pl
from jax.experimental.pallas import tpu as pltpu


def _ce_ls_tile_kernel(x_ref, tgt_ref, part_ref, *,
                       epsilon, batch_size, tile_batch):
    """One batch tile: emits -sum_i sum_j t_ij * log_probs_ij for its rows."""
    i = pl.program_id(0)

    x = x_ref[...].astype(jnp.float32)            # (TB, C) logits (f32 compute)
    tb, C = x.shape

    # Row-validity mask only needed when the last tile is ragged (static check).
    ragged = (batch_size % tile_batch) != 0
    if ragged:
        row_ids = i * tile_batch + lax.broadcasted_iota(jnp.int32, (tb, 1), 0)
        valid = row_ids < batch_size              # (TB, 1) bool
        x = jnp.where(valid, x, 0.0)              # keep OOB rows finite

    # Decomposed label-smoothed CE (no log_probs / smoothed-target matrices):
    #   log_probs_ij = shifted_ij - lse_i
    #   sum_j t_ij*logp_ij = (1-eps)*(g_i - lse_i) + (eps/C)*(s_i - C*lse_i)
    m = jnp.max(x, axis=1, keepdims=True)                          # (TB, 1)
    shifted = x - m                                                # (TB, C)
    lse = jnp.log(jnp.sum(jnp.exp(shifted), axis=1, keepdims=True))  # (TB, 1)
    s = jnp.sum(shifted, axis=1, keepdims=True)                    # (TB, 1)

    tgt = tgt_ref[...]                                             # (TB, 1) i32
    cls_iota = lax.broadcasted_iota(jnp.int32, (tb, C), 1)
    g = jnp.sum(jnp.where(cls_iota == tgt, shifted, 0.0),
                axis=1, keepdims=True)                             # (TB, 1)

    off = epsilon / float(C)
    per_row = (1.0 - epsilon) * (g - lse) + off * (s - float(C) * lse)
    if ragged:
        per_row = jnp.where(valid, per_row, 0.0)

    part_ref[0, 0] = -jnp.sum(per_row)


def _pick_tile_batch(bs, C, budget_bytes=8 * 1024 * 1024):
    """Largest multiple-of-8 batch tile whose f32 logits fit ~budget_bytes."""
    if bs <= 8:
        return bs
    tb = min(bs, max(8, budget_bytes // (C * 4)))
    tb = max(8, (tb // 8) * 8)
    tb = min(tb, 1024)
    return bs if tb >= bs else tb


def cross_entropy_label_smooth(inputs, targets, *, num_classes, epsilon=0.1,
                               tile_batch=None):
    """Pallas implementation of CrossEntropyLabelSmooth.forward.

    inputs:  (bs, num_classes) float logits
    targets: (bs,) integer class labels
    returns: scalar float32 loss
    """
    bs, C = inputs.shape
    assert C == num_classes
    tb = _pick_tile_batch(bs, C) if tile_batch is None else tile_batch
    assert tb == bs or tb % 8 == 0, "tile_batch must be a multiple of 8 or == bs"
    num_tiles = pl.cdiv(bs, tb)

    tgt2d = targets.astype(jnp.int32).reshape(bs, 1)

    kernel = functools.partial(
        _ce_ls_tile_kernel, epsilon=float(epsilon), batch_size=bs, tile_batch=tb)

    tile_bytes = tb * C * 4
    # 2x double-buffered input tile + compute temporaries + slack; capped well
    # below v7x's 64 MiB physical VMEM, above v5e's 16 MiB scoped default.
    vmem_limit = int(min(48 * 1024 * 1024,
                         max(4 * 1024 * 1024, 4 * tile_bytes + (2 << 20))))

    cost = pl.CostEstimate(
        flops=int(6 * bs * C),
        transcendentals=int(bs * C),
        bytes_accessed=int(4 * bs * C + 4 * bs + 4 * num_tiles),
    )

    partials = pl.pallas_call(
        kernel,
        out_shape=jax.ShapeDtypeStruct((num_tiles, 1), jnp.float32),
        grid_spec=pltpu.PrefetchScalarGridSpec(
            num_scalar_prefetch=0,
            grid=(num_tiles,),
            in_specs=[
                pl.BlockSpec((tb, C), lambda i: (i, 0)),
                pl.BlockSpec((tb, 1), lambda i: (i, 0)),
            ],
            out_specs=pl.BlockSpec((1, 1), lambda i: (i, 0),
                                   memory_space=pltpu.MemorySpace.SMEM),
        ),
        compiler_params=pltpu.CompilerParams(
            dimension_semantics=("parallel",),
            vmem_limit_bytes=vmem_limit,
        ),
        cost_estimate=cost,
    )(inputs, tgt2d)

    # Tiny final reduction in XLA: sum of per-tile partials, mean over batch.
    return jnp.sum(partials) / bs


def _reference_jax(inputs, targets, *, num_classes, epsilon):
    """Pure-JAX reference mirroring the PyTorch forward, for verification."""
    log_probs = jax.nn.log_softmax(inputs.astype(jnp.float32), axis=1)
    onehot = jax.nn.one_hot(targets, num_classes, dtype=jnp.float32)
    t = (1.0 - epsilon) * onehot + epsilon / num_classes
    return (-t * log_probs).mean(0).sum()


if __name__ == "__main__":
    EPS = 0.1
    key = jax.random.PRNGKey(0)

    # (bs, C, forced tile) -- covers single tile, multi-tile grid, ragged tile.
    cases = [
        (8, 128, None),   # single full block
        (24, 256, 8),     # 3 batch tiles, parallel partials
        (20, 128, 8),     # 3 tiles, ragged last tile (row masking path)
    ]

    for bs, C, tb in cases:
        key, k_x, k_t = jax.random.split(key, 3)
        inputs = jax.random.normal(k_x, (bs, C), dtype=jnp.float32)
        targets = jax.random.randint(k_t, (bs,), 0, C, dtype=jnp.int32)

        loss = cross_entropy_label_smooth(
            inputs, targets, num_classes=C, epsilon=EPS, tile_batch=tb)
        loss = jax.block_until_ready(loss)

        ref = _reference_jax(inputs, targets, num_classes=C, epsilon=EPS)
        assert jnp.allclose(loss, ref, rtol=1e-5, atol=1e-5), (bs, C, tb, loss, ref)

    # TODO(synk): only the forward is implemented; wrap in jax.custom_vjp if the
    # loss is differentiated during training.
    print("KERNEL_OK")
</pallas_src>

<mosaic_0001>
module attributes {stable_mosaic.version = 11 : i64} {
  func.func @_ce_ls_tile_kernel(%arg0: i32, %arg1: memref<8x128xf32, #tpu.memory_space<vmem>>, %arg2: memref<8x1xi32, #tpu.memory_space<vmem>>, %arg3: memref<1x1xf32, #tpu.memory_space<smem>>) attributes {dimension_semantics = [#tpu.dimension_semantics<parallel>], iteration_bounds = array<i64: 1>, scalar_prefetch = 0 : i64, scratch_operands = 0 : i64, tpu.core_type = #tpu.core_type<tc>, window_params = [{transform_indices = @transform_0, window_bounds = array<i64: 8, 128>}, {transform_indices = @transform_1, window_bounds = array<i64: 8, 1>}, {transform_indices = @transform_2, window_bounds = array<i64: 1, 1>}]} {
    %c0 = arith.constant 0 : index
    %c0_0 = arith.constant 0 : index
    %0 = vector.load %arg1[%c0, %c0_0] : memref<8x128xf32, #tpu.memory_space<vmem>>, vector<8x128xf32>
    %cst = arith.constant dense<0xFF800000> : vector<8xf32>
    %1 = vector.multi_reduction <maximumf>, %0, %cst [1] : vector<8x128xf32> to vector<8xf32>
    %2 = vector.shape_cast %1 : vector<8xf32> to vector<8x1xf32>
    %3 = vector.broadcast %2 : vector<8x1xf32> to vector<8x128xf32>
    %4 = arith.subf %0, %3 : vector<8x128xf32>
    %5 = math.exp %4 : vector<8x128xf32>
    %cst_1 = arith.constant dense<0.000000e+00> : vector<8xf32>
    %6 = vector.multi_reduction <add>, %5, %cst_1 [1] : vector<8x128xf32> to vector<8xf32>
    %7 = vector.shape_cast %6 : vector<8xf32> to vector<8x1xf32>
    %8 = math.log %7 : vector<8x1xf32>
    %cst_2 = arith.constant dense<0.000000e+00> : vector<8xf32>
    %9 = vector.multi_reduction <add>, %4, %cst_2 [1] : vector<8x128xf32> to vector<8xf32>
    %10 = vector.shape_cast %9 : vector<8xf32> to vector<8x1xf32>
    %c0_3 = arith.constant 0 : index
    %c0_4 = arith.constant 0 : index
    %11 = vector.load %arg2[%c0_3, %c0_4] : memref<8x1xi32, #tpu.memory_space<vmem>>, vector<8x1xi32>
    %12 = tpu.iota {dimensions = array<i32: 1>} : vector<8x128xi32>
    %13 = vector.broadcast %11 : vector<8x1xi32> to vector<8x128xi32>
    %14 = arith.cmpi eq, %12, %13 : vector<8x128xi32>
    %cst_5 = arith.constant 0.000000e+00 : f32
    %15 = vector.broadcast %cst_5 : f32 to vector<8x128xf32>
    %16 = arith.select %14, %4, %15 : vector<8x128xi1>, vector<8x128xf32>
    %cst_6 = arith.constant dense<0.000000e+00> : vector<8xf32>
    %17 = vector.multi_reduction <add>, %16, %cst_6 [1] : vector<8x128xf32> to vector<8xf32>
    %18 = vector.shape_cast %17 : vector<8xf32> to vector<8x1xf32>
    %19 = arith.subf %18, %8 : vector<8x1xf32>
    %cst_7 = arith.constant 0.899999976 : f32
    %20 = vector.broadcast %cst_7 : f32 to vector<8x1xf32>
    %21 = arith.mulf %20, %19 : vector<8x1xf32>
    %cst_8 = arith.constant 1.280000e+02 : f32
    %22 = vector.broadcast %cst_8 : f32 to vector<8x1xf32>
    %23 = arith.mulf %22, %8 : vector<8x1xf32>
    %24 = arith.subf %10, %23 : vector<8x1xf32>
    %cst_9 = arith.constant 7.812500e-04 : f32
    %25 = vector.broadcast %cst_9 : f32 to vector<8x1xf32>
    %26 = arith.mulf %25, %24 : vector<8x1xf32>
    %27 = arith.addf %21, %26 : vector<8x1xf32>
    %28 = vector.shape_cast %27 : vector<8x1xf32> to vector<1x8x1xf32>
    %cst_10 = arith.constant dense<0.000000e+00> : vector<1xf32>
    %29 = vector.multi_reduction <add>, %28, %cst_10 [1, 2] : vector<1x8x1xf32> to vector<1xf32>
    %30 = vector.shape_cast %29 : vector<1xf32> to vector<1x1x1xf32>
    %31 = vector.extract %30[0, 0, 0] : f32 from vector<1x1x1xf32>
    %cst_11 = arith.constant 0.000000e+00 : f32
    %32 = arith.subf %cst_11, %31 : f32
    %c0_12 = arith.constant 0 : index
    %c0_13 = arith.constant 0 : index
    %33 = memref.load %arg3[%c0_12, %c0_13] : memref<1x1xf32, #tpu.memory_space<smem>>
    memref.store %32, %arg3[%c0_12, %c0_13] : memref<1x1xf32, #tpu.memory_space<smem>>
    return
  }
  func.func @transform_0(%arg0: i32) -> (i32, i32) {
    %c0_i32 = arith.constant 0 : i32
    %c0_i32_0 = arith.constant 0 : i32
    return %arg0, %c0_i32 : i32, i32
  }
  func.func @transform_1(%arg0: i32) -> (i32, i32) {
    %c0_i32 = arith.constant 0 : i32
    %c0_i32_0 = arith.constant 0 : i32
    return %arg0, %c0_i32 : i32, i32
  }
  func.func @transform_2(%arg0: i32) -> (i32, i32) {
    %c0_i32 = arith.constant 0 : i32
    %c0_i32_0 = arith.constant 0 : i32
    return %arg0, %c0_i32 : i32, i32
  }
}

</mosaic_0001>

<bundles_post_ra>
// kernel: tpu_custom_call.1
= control target key start
LH: loop header
LB: loop body
LE: loop exit
PB: predicated region body
PF: predicated region fallthrough
CT: control target
= control target key end

     0   :  { %s123_s0 = inlined_call_operand.vmem [shape: f32[8,128], index: 0, kind: input, shape index: {}]   ;;  %s124_s1 = inlined_call_operand.vmem [shape: s32[8,1], index: 1, kind: input, shape index: {}]   ;;  %s125_s2 = inlined_call_operand.hbm [shape: f32[1,1], index: 2, kind: output, shape index: {}]  }
   0x1   :  { %v12_v0 = vld [vmem:[%s123_s0] sm:$0xff] }
   0x2   :  { %7 = vsyncpa [#allocation3], 0  ;;  %13 = vmax.xlane.f32.xlu0 %v12_v0  ;;  %v88_v1 = vmov 0   ;;  %v24_v2 = vld [vmem:[%s124_s1] sm:$0xff]  ;;  %v25_v6 = vlaneseq  ;;  %vm40_vm1 = vcmask 7168   ;;  %s76_s15 = scalar_lea.hbm %s125_s2, 16 }
   0x3   :  { %71 = vset.pattern.permute.xlu0 %v88_v1  ;;  %p77_p0 = scmp.ne.s32.totalorder %s125_s2, %s76_s15  ;;  %p80_p1 = scmp.lt.u32.totalorder %s76_s15, %s125_s2 }
   0x4   :  { %v26_v8 = vand.u32 127, %v25_v6 }
   0x5   :  { %p82_p2 = pnand %p80_p1, %p77_p0 }
  0x18   :  { %28 = vperm.xlu0 %71, %v24_v2  }
  0x8f   :  { %v14_v3 = vpop.xlane.xlu0 %13 }
  0x90   :  { %v15_v4 = vsub.f32 %v12_v0, %v14_v3 }
  0x92   :  { %v16_v5 = vmul.f32 1.442695, %v15_v4 }
  0x94   :  { %72 = vpow2.f32 %v16_v5 }
  0x97   :  { %v29_v9 = vpop.permute.xlu0 %28 }
  0x98   :  { %vm30_vm0 = vcmp.eq.s32.totalorder %v26_v8, %v29_v9 }
  0x99   :  { %v31_v10 = vsel %vm30_vm0, %v15_v4, 0.0 }
  0x9e   :  { %v73_v7 = vpop.eup %72 }
  0x9f   :  { %18 = vadd.xlane.f32.xlu1 %v73_v7 }
  0xa3   :  { %22 = vadd.xlane.f32.xlu1 %v15_v4 }
  0xa7   :  { %32 = vadd.xlane.f32.xlu1 %v31_v10 }
 0x12c   :  { %v19_v11 = vpop.xlane.xlu1 %18 }
 0x12d   :  { %74 = vlog2.f32 %v19_v11 }
 0x130   :  { %v23_v12 = vpop.xlane.xlu1 %22 }
 0x134   :  { %v33_v15 = vpop.xlane.xlu1 %32 }
 0x137   :  { %v75_v13 = vpop.eup %74 }
 0x138   :  { %v21_v14 = vmul.f32 0.6931472, %v75_v13 }
 0x13a   :  { %v36_v16 = vmul.f32 128.0, %v21_v14  ;;  %v34_v17 = vsub.f32 %v33_v15, %v21_v14 }
 0x13c   :  { %v37_v18 = vsub.f32 %v23_v12, %v36_v16  ;;  %v35_v20 = vmul.f32 0.9, %v34_v17 }
 0x13e   :  { %v38_v19 = vmul.f32 0.00078125, %v37_v18 }
 0x140   :  { %v39_v21 = vadd.f32 %v38_v19, %v35_v20 }
 0x142   :  { %v41_v22 = vsel %vm40_vm1, %v39_v21, 0.0 }
 0x143   :  { %42 = vadd.xlane.f32.xlu1 %v41_v22 }
 0x1d0   :  { %v43_v23 = vpop.xlane.xlu1 %42 }
 0x1d1   :  { %v44_v24 = vrot.slane %v43_v23, 4 }
 0x1d3   :  { %v45_v25 = vadd.f32 %v44_v24, %v43_v23 }
 0x1d5   :  { %v46_v26 = vrot.slane %v45_v25, 2 }
 0x1d7   :  { %v47_v27 = vadd.f32 %v46_v26, %v45_v25 }
 0x1d9   :  { %v48_v28 = vrot.slane %v47_v27, 1 }
 0x1db   :  { %v49_v29 = vadd.f32 %v48_v28, %v47_v27 }
 0x1dd   :  { %67 = vpush %v49_v29 }
 0x20e   :  { %s68_s0 = spop %67 }
 0x20f   :  { %s51_s1 = ssub.f32 0.0, %s68_s0 }
 0x211   :  { %53 = sst [smem:[#allocation2]] %s51_s1 }
 0x212   :  { %85 = shalt.err (!%p82_p2)
}
 0x213   :  { %s89_s20 = smov [#allocation2]  }
 0x214   :  { %61 = dma.smem_to_hbm %s89_s20, 16, %s125_s2, [#allocation3]  }
 0x215   :  { %86 = dma.done.wait [#allocation3], 16  }
 0x216   :  { %87 = vsyncadd [#allocation3], 4294967280 }
 0x217   :  { %65 = sfence }
 0x218   :  { %66 = vsyncpa [#allocation3], 1 }

</bundles_post_ra>
